<compile_context>
chip_gen: v6e
topology: v6e:2x2x1
jax: 0.10.0
libtpu: 0.0.40
codegen_flags: <defaults>
</compile_context>

<pallas_src>
import math

import jax
import jax.numpy as jnp
from jax.experimental import pallas as pl
from jax.experimental.pallas import tpu as pltpu

INPUT_DIM = 3
HIDDEN_DIMS = [64, 64, 32]
OUTPUT_DIM = 1


def _round_up(n, m):
    return ((n + m - 1) // m) * m


def _default_compute_dtype():
    """bf16 for the MXU layers on v6e/v7x; f32 elsewhere (v5e has no bf16 VPU/EUP)."""
    try:
        kind = jax.devices()[0].device_kind.lower()
    except Exception:
        return jnp.float32
    if "v6" in kind or "v7" in kind:
        return jnp.bfloat16
    return jnp.float32


def _pinn_mlp_kernel(x_ref,
                     w1_ref, b1_ref,
                     w2_ref, b2_ref,
                     w3_ref, b3_ref,
                     w4_ref, b4_ref,
                     o_ref):
    """Fused MLP forward in feature-major layout: h = tanh(W @ h + b)."""
    cdt = w2_ref.dtype                 # compute dtype of the MXU layers (f32 or bf16)

    x = x_ref[...]                     # (3, TB)  float32, batch on the lane axis
    w1 = w1_ref[...]                   # (64, 3)  float32

    # ---- layer 1 (in=3): three VPU broadcast-FMAs, no MXU --------------------
    z1 = (w1[:, 0:1] * x[0:1, :] +
          w1[:, 1:2] * x[1:2, :] +
          w1[:, 2:3] * x[2:3, :] + b1_ref[...])                    # (64, TB) f32
    h = jnp.tanh(z1.astype(cdt))

    # ---- layer 2 (64 -> 64): MXU, f32 accumulation ----------------------------
    z2 = jnp.dot(w2_ref[...], h, preferred_element_type=jnp.float32) + b2_ref[...]
    h = jnp.tanh(z2.astype(cdt))                                   # (64, TB)

    # ---- layer 3 (64 -> 32): MXU, f32 accumulation ----------------------------
    z3 = jnp.dot(w3_ref[...], h, preferred_element_type=jnp.float32) + b3_ref[...]
    h = jnp.tanh(z3.astype(cdt))                                   # (32, TB)

    # ---- layer 4 (out=1): VPU multiply + sublane reduce, no MXU ---------------
    w4 = w4_ref[...]                                               # (32, 1) f32
    out = jnp.sum(w4 * h, axis=0, keepdims=True) + b4_ref[...]     # (1, TB) f32
    o_ref[...] = out.astype(o_ref.dtype)


def pinn_forward(x, params, *, batch_tile=1024, compute_dtype=None):
    """Run the EnhancedPINNNetwork forward pass as a single Pallas kernel.

    Args:
      x: (batch, INPUT_DIM) float array.
      params: list of (W, b) tuples, W: (in, out), b: (1, out) (PyTorch semantics).
      batch_tile: max batch tile size on the lane axis (rounded to 128).
      compute_dtype: dtype for the MXU layers / tanh (None -> auto per TPU gen).
    Returns:
      (batch, OUTPUT_DIM) float32 array.
    """
    if compute_dtype is None:
        compute_dtype = _default_compute_dtype()

    batch, in_dim = x.shape
    assert in_dim == INPUT_DIM, x.shape

    # Lane-dense batch tile (multiple of 128); avoid over-padding tiny batches.
    tb = min(_round_up(batch_tile, 128), _round_up(max(batch, 1), 128))
    b_pad = _round_up(batch, tb)
    n_tiles = b_pad // tb

    # Feature-major layout: batch on the 128-lane axis, zero-pad the remainder.
    xt = jnp.pad(x.astype(jnp.float32).T, ((0, 0), (0, b_pad - batch)))   # (3, b_pad)

    (w1, b1), (w2, b2), (w3, b3), (w4, b4) = params
    w1t, b1t = w1.T.astype(jnp.float32), b1.T.astype(jnp.float32)         # (64,3),(64,1)
    w2t, b2t = w2.T.astype(compute_dtype), b2.T.astype(jnp.float32)       # (64,64),(64,1)
    w3t, b3t = w3.T.astype(compute_dtype), b3.T.astype(jnp.float32)       # (32,64),(32,1)
    w4c, b4c = w4.astype(jnp.float32), b4.T.astype(jnp.float32)           # (32,1),(1,1)
    params_flat = (w1t, b1t, w2t, b2t, w3t, b3t, w4c, b4c)

    def resident(p):
        # Weights/biases stay resident across all batch tiles.
        return pl.BlockSpec(p.shape, lambda i: (0, 0))

    in_specs = [pl.BlockSpec((INPUT_DIM, tb), lambda i: (0, i))]
    in_specs += [resident(p) for p in params_flat]
    out_spec = pl.BlockSpec((OUTPUT_DIM, tb), lambda i: (0, i))

    # Advisory cost estimate for XLA's scheduler.
    dims = [INPUT_DIM] + HIDDEN_DIMS + [OUTPUT_DIM]
    flops = 2 * b_pad * sum(a * b for a, b in zip(dims[:-1], dims[1:]))
    transcendentals = b_pad * sum(HIDDEN_DIMS)
    param_bytes = sum(int(p.size) * p.dtype.itemsize for p in params_flat)
    bytes_accessed = b_pad * (INPUT_DIM + OUTPUT_DIM) * 4 + param_bytes

    out_t = pl.pallas_call(
        _pinn_mlp_kernel,
        out_shape=jax.ShapeDtypeStruct((OUTPUT_DIM, b_pad), jnp.float32),
        grid=(n_tiles,),
        in_specs=in_specs,
        out_specs=out_spec,
        compiler_params=pltpu.CompilerParams(
            dimension_semantics=("parallel",),   # v7x: shard batch tiles over 2 TCs
            vmem_limit_bytes=16 * 1024 * 1024,   # per-tile working set is <1 MiB
        ),
        cost_estimate=pl.CostEstimate(
            flops=flops,
            transcendentals=transcendentals,
            bytes_accessed=bytes_accessed,
        ),
    )(xt, *params_flat)

    return out_t.T[:batch, :]                    # back to (batch, OUTPUT_DIM)


def init_params(key):
    """Deterministic init matching PyTorch nn.Linear default
    (uniform(-1/sqrt(fan_in), 1/sqrt(fan_in)) for both weight and bias)."""
    layer_dims = [INPUT_DIM] + HIDDEN_DIMS + [OUTPUT_DIM]
    params = []
    for i in range(len(layer_dims) - 1):
        fan_in, fan_out = layer_dims[i], layer_dims[i + 1]
        key, kw, kb = jax.random.split(key, 3)
        bound = 1.0 / math.sqrt(fan_in)
        w = jax.random.uniform(kw, (fan_in, fan_out), jnp.float32,
                               minval=-bound, maxval=bound)
        b = jax.random.uniform(kb, (1, fan_out), jnp.float32,
                               minval=-bound, maxval=bound)
        params.append((w, b))
    return params


def reference_forward(x, params):
    """Plain-JAX reference for correctness check."""
    h = x
    n = len(params)
    for i, (w, b) in enumerate(params):
        h = h @ w + b
        if i < n - 1:
            h = jnp.tanh(h)
    return h


# TODO(synk): physics_loss / constraint evaluation and the metrics bookkeeping in the
# PyTorch module are host-side autograd/sympy logic and are not part of this kernel.

if __name__ == "__main__":
    key = jax.random.PRNGKey(0)
    key, kx = jax.random.split(key)

    batch = 8
    x = jax.random.normal(kx, (batch, INPUT_DIM), jnp.float32)

    params = init_params(key)

    compute_dtype = _default_compute_dtype()
    out = pinn_forward(x, params, compute_dtype=compute_dtype)
    out = jax.block_until_ready(out)

    ref = reference_forward(x, params)
    assert out.shape == (batch, OUTPUT_DIM), out.shape
    tol = 5e-2 if compute_dtype == jnp.bfloat16 else 1e-5
    max_err = jnp.max(jnp.abs(out - ref))
    assert jnp.allclose(out, ref, atol=tol, rtol=tol), f"max abs err = {max_err}"

    print("KERNEL_OK")
</pallas_src>

<mosaic_0001>
module attributes {stable_mosaic.version = 11 : i64} {
  func.func @_pinn_mlp_kernel(%arg0: i32, %arg1: memref<3x128xf32, #tpu.memory_space<vmem>>, %arg2: memref<64x3xf32, #tpu.memory_space<vmem>>, %arg3: memref<64x1xf32, #tpu.memory_space<vmem>>, %arg4: memref<64x64xf32, #tpu.memory_space<vmem>>, %arg5: memref<64x1xf32, #tpu.memory_space<vmem>>, %arg6: memref<32x64xf32, #tpu.memory_space<vmem>>, %arg7: memref<32x1xf32, #tpu.memory_space<vmem>>, %arg8: memref<32x1xf32, #tpu.memory_space<vmem>>, %arg9: memref<1x1xf32, #tpu.memory_space<vmem>>, %arg10: memref<1x128xf32, #tpu.memory_space<vmem>>) attributes {dimension_semantics = [#tpu.dimension_semantics<parallel>], iteration_bounds = array<i64: 1>, scalar_prefetch = 0 : i64, scratch_operands = 0 : i64, tpu.core_type = #tpu.core_type<tc>, window_params = [{transform_indices = @transform_0, window_bounds = array<i64: 3, 128>}, {pipeline_mode = #tpu.pipeline_mode<synchronous>, transform_indices = @transform_1, window_bounds = array<i64: 64, 3>}, {pipeline_mode = #tpu.pipeline_mode<synchronous>, transform_indices = @transform_2, window_bounds = array<i64: 64, 1>}, {pipeline_mode = #tpu.pipeline_mode<synchronous>, transform_indices = @transform_3, window_bounds = array<i64: 64, 64>}, {pipeline_mode = #tpu.pipeline_mode<synchronous>, transform_indices = @transform_4, window_bounds = array<i64: 64, 1>}, {pipeline_mode = #tpu.pipeline_mode<synchronous>, transform_indices = @transform_5, window_bounds = array<i64: 32, 64>}, {pipeline_mode = #tpu.pipeline_mode<synchronous>, transform_indices = @transform_6, window_bounds = array<i64: 32, 1>}, {pipeline_mode = #tpu.pipeline_mode<synchronous>, transform_indices = @transform_7, window_bounds = array<i64: 32, 1>}, {pipeline_mode = #tpu.pipeline_mode<synchronous>, transform_indices = @transform_8, window_bounds = array<i64: 1, 1>}, {transform_indices = @transform_9, window_bounds = array<i64: 1, 128>}]} {
    %c0 = arith.constant 0 : index
    %c0_0 = arith.constant 0 : index
    %0 = vector.load %arg1[%c0, %c0_0] : memref<3x128xf32, #tpu.memory_space<vmem>>, vector<3x128xf32>
    %c0_1 = arith.constant 0 : index
    %c0_2 = arith.constant 0 : index
    %1 = vector.load %arg2[%c0_1, %c0_2] : memref<64x3xf32, #tpu.memory_space<vmem>>, vector<64x3xf32>
    %2 = vector.extract_strided_slice %1 {offsets = [0, 0], sizes = [64, 1], strides = [1, 1]} : vector<64x3xf32> to vector<64x1xf32>
    %3 = vector.extract_strided_slice %0 {offsets = [0, 0], sizes = [1, 128], strides = [1, 1]} : vector<3x128xf32> to vector<1x128xf32>
    %4 = vector.broadcast %2 : vector<64x1xf32> to vector<64x128xf32>
    %5 = vector.broadcast %3 : vector<1x128xf32> to vector<64x128xf32>
    %6 = arith.mulf %4, %5 : vector<64x128xf32>
    %7 = vector.extract_strided_slice %1 {offsets = [0, 1], sizes = [64, 1], strides = [1, 1]} : vector<64x3xf32> to vector<64x1xf32>
    %8 = vector.extract_strided_slice %0 {offsets = [1, 0], sizes = [1, 128], strides = [1, 1]} : vector<3x128xf32> to vector<1x128xf32>
    %9 = vector.broadcast %7 : vector<64x1xf32> to vector<64x128xf32>
    %10 = vector.broadcast %8 : vector<1x128xf32> to vector<64x128xf32>
    %11 = arith.mulf %9, %10 : vector<64x128xf32>
    %12 = arith.addf %6, %11 : vector<64x128xf32>
    %13 = vector.extract_strided_slice %1 {offsets = [0, 2], sizes = [64, 1], strides = [1, 1]} : vector<64x3xf32> to vector<64x1xf32>
    %14 = vector.extract_strided_slice %0 {offsets = [2, 0], sizes = [1, 128], strides = [1, 1]} : vector<3x128xf32> to vector<1x128xf32>
    %15 = vector.broadcast %13 : vector<64x1xf32> to vector<64x128xf32>
    %16 = vector.broadcast %14 : vector<1x128xf32> to vector<64x128xf32>
    %17 = arith.mulf %15, %16 : vector<64x128xf32>
    %18 = arith.addf %12, %17 : vector<64x128xf32>
    %c0_3 = arith.constant 0 : index
    %c0_4 = arith.constant 0 : index
    %19 = vector.load %arg3[%c0_3, %c0_4] : memref<64x1xf32, #tpu.memory_space<vmem>>, vector<64x1xf32>
    %20 = vector.broadcast %19 : vector<64x1xf32> to vector<64x128xf32>
    %21 = arith.addf %18, %20 : vector<64x128xf32>
    %22 = math.tanh %21 : vector<64x128xf32>
    %c0_5 = arith.constant 0 : index
    %c0_6 = arith.constant 0 : index
    %23 = vector.load %arg4[%c0_5, %c0_6] : memref<64x64xf32, #tpu.memory_space<vmem>>, vector<64x64xf32>
    %cst = arith.constant dense<0.000000e+00> : vector<64x128xf32>
    %24 = tpu.matmul %23, %22, %cst {dimension_numbers = #tpu.dot_dimension_numbers<[1], [0], [0], [1], [0, 0, 1, 1], [], []>} : vector<64x64xf32>, vector<64x128xf32>, vector<64x128xf32> -> vector<64x128xf32>
    %c0_7 = arith.constant 0 : index
    %c0_8 = arith.constant 0 : index
    %25 = vector.load %arg5[%c0_7, %c0_8] : memref<64x1xf32, #tpu.memory_space<vmem>>, vector<64x1xf32>
    %26 = vector.broadcast %25 : vector<64x1xf32> to vector<64x128xf32>
    %27 = arith.addf %24, %26 : vector<64x128xf32>
    %28 = math.tanh %27 : vector<64x128xf32>
    %c0_9 = arith.constant 0 : index
    %c0_10 = arith.constant 0 : index
    %29 = vector.load %arg6[%c0_9, %c0_10] : memref<32x64xf32, #tpu.memory_space<vmem>>, vector<32x64xf32>
    %cst_11 = arith.constant dense<0.000000e+00> : vector<32x128xf32>
    %30 = tpu.matmul %29, %28, %cst_11 {dimension_numbers = #tpu.dot_dimension_numbers<[1], [0], [0], [1], [0, 0, 1, 1], [], []>} : vector<32x64xf32>, vector<64x128xf32>, vector<32x128xf32> -> vector<32x128xf32>
    %c0_12 = arith.constant 0 : index
    %c0_13 = arith.constant 0 : index
    %31 = vector.load %arg7[%c0_12, %c0_13] : memref<32x1xf32, #tpu.memory_space<vmem>>, vector<32x1xf32>
    %32 = vector.broadcast %31 : vector<32x1xf32> to vector<32x128xf32>
    %33 = arith.addf %30, %32 : vector<32x128xf32>
    %34 = math.tanh %33 : vector<32x128xf32>
    %c0_14 = arith.constant 0 : index
    %c0_15 = arith.constant 0 : index
    %35 = vector.load %arg8[%c0_14, %c0_15] : memref<32x1xf32, #tpu.memory_space<vmem>>, vector<32x1xf32>
    %36 = vector.broadcast %35 : vector<32x1xf32> to vector<32x128xf32>
    %37 = arith.mulf %36, %34 : vector<32x128xf32>
    %cst_16 = arith.constant dense<0.000000e+00> : vector<128xf32>
    %38 = vector.multi_reduction <add>, %37, %cst_16 [0] : vector<32x128xf32> to vector<128xf32>
    %39 = vector.shape_cast %38 : vector<128xf32> to vector<1x128xf32>
    %c0_17 = arith.constant 0 : index
    %c0_18 = arith.constant 0 : index
    %40 = vector.load %arg9[%c0_17, %c0_18] : memref<1x1xf32, #tpu.memory_space<vmem>>, vector<1x1xf32>
    %41 = vector.broadcast %40 : vector<1x1xf32> to vector<1x128xf32>
    %42 = arith.addf %39, %41 : vector<1x128xf32>
    %c0_19 = arith.constant 0 : index
    %c0_20 = arith.constant 0 : index
    %43 = vector.load %arg10[%c0_19, %c0_20] : memref<1x128xf32, #tpu.memory_space<vmem>>, vector<1x128xf32>
    tpu.vector_store %arg10[%c0_19, %c0_20], %42 {strides = array<i32>} : memref<1x128xf32, #tpu.memory_space<vmem>>, vector<1x128xf32>,
    return
  }
  func.func @transform_0(%arg0: i32) -> (i32, i32) {
    %c0_i32 = arith.constant 0 : i32
    %c0_i32_0 = arith.constant 0 : i32
    return %c0_i32, %arg0 : i32, i32
  }
  func.func @transform_1(%arg0: i32) -> (i32, i32) {
    %c0_i32 = arith.constant 0 : i32
    %c0_i32_0 = arith.constant 0 : i32
    %c0_i32_1 = arith.constant 0 : i32
    return %c0_i32, %c0_i32_0 : i32, i32
  }
  func.func @transform_2(%arg0: i32) -> (i32, i32) {
    %c0_i32 = arith.constant 0 : i32
    %c0_i32_0 = arith.constant 0 : i32
    %c0_i32_1 = arith.constant 0 : i32
    return %c0_i32, %c0_i32_0 : i32, i32
  }
  func.func @transform_3(%arg0: i32) -> (i32, i32) {
    %c0_i32 = arith.constant 0 : i32
    %c0_i32_0 = arith.constant 0 : i32
    %c0_i32_1 = arith.constant 0 : i32
    return %c0_i32, %c0_i32_0 : i32, i32
  }
  func.func @transform_4(%arg0: i32) -> (i32, i32) {
    %c0_i32 = arith.constant 0 : i32
    %c0_i32_0 = arith.constant 0 : i32
    %c0_i32_1 = arith.constant 0 : i32
    return %c0_i32, %c0_i32_0 : i32, i32
  }
  func.func @transform_5(%arg0: i32) -> (i32, i32) {
    %c0_i32 = arith.constant 0 : i32
    %c0_i32_0 = arith.constant 0 : i32
    %c0_i32_1 = arith.constant 0 : i32
    return %c0_i32, %c0_i32_0 : i32, i32
  }
  func.func @transform_6(%arg0: i32) -> (i32, i32) {
    %c0_i32 = arith.constant 0 : i32
    %c0_i32_0 = arith.constant 0 : i32
    %c0_i32_1 = arith.constant 0 : i32
    return %c0_i32, %c0_i32_0 : i32, i32
  }
  func.func @transform_7(%arg0: i32) -> (i32, i32) {
    %c0_i32 = arith.constant 0 : i32
    %c0_i32_0 = arith.constant 0 : i32
    %c0_i32_1 = arith.constant 0 : i32
    return %c0_i32, %c0_i32_0 : i32, i32
  }
  func.func @transform_8(%arg0: i32) -> (i32, i32) {
    %c0_i32 = arith.constant 0 : i32
    %c0_i32_0 = arith.constant 0 : i32
    %c0_i32_1 = arith.constant 0 : i32
    return %c0_i32, %c0_i32_0 : i32, i32
  }
  func.func @transform_9(%arg0: i32) -> (i32, i32) {
    %c0_i32 = arith.constant 0 : i32
    %c0_i32_0 = arith.constant 0 : i32
    return %c0_i32, %arg0 : i32, i32
  }
}

</mosaic_0001>

<bundles_post_ra>
// kernel: tpu_custom_call.1
= control target key start
LH: loop header
LB: loop body
LE: loop exit
PB: predicated region body
PF: predicated region fallthrough
CT: control target
= control target key end

     0   :  { %s1095_s0 = inlined_call_operand.vmem [shape: f32[3,128], index: 0, kind: input, shape index: {}]   ;;  %s1096_s1 = inlined_call_operand.vmem [shape: f32[64,3], index: 1, kind: input, shape index: {}]   ;;  %s1097_s2 = inlined_call_operand.vmem [shape: f32[64,1], index: 2, kind: input, shape index: {}]   ;;  %s1098_s3 = inlined_call_operand.vmem [shape: f32[64,64], index: 3, kind: input, shape index: {}]   ;;  %s1099_s4 = inlined_call_operand.vmem [shape: f32[64,1], index: 4, kind: input, shape index: {}]   ;;  %s1100_s5 = inlined_call_operand.vmem [shape: f32[32,64], index: 5, kind: input, shape index: {}]   ;;  %s1101_s6 = inlined_call_operand.vmem [shape: f32[32,1], index: 6, kind: input, shape index: {}]   ;;  %s1102_s7 = inlined_call_operand.vmem [shape: f32[32,1], index: 7, kind: input, shape index: {}]   ;;  %s1103_s8 = inlined_call_operand.<no memory space> [shape: f32[1,1], index: 8, kind: input, shape index: {}]   ;;  %s1104_s9 = inlined_call_operand.hbm [shape: f32[1,128], index: 9, kind: output, shape index: {}]  }
   0x1   :  { %v14_v0 = vstv %s1103_s8 }
   0x2   :  { %15 = vst [vmem:[#allocation2] sm:$0x1] %v14_v0 }
   0x3   :  { %v42_v1 = vld [vmem:[%s1096_s1 + $0x30] sm:$0xff]  ;;  %v41_v2 = vld [vmem:[%s1096_s1 + $0x28] sm:$0xff]  ;;  %v826_v3 = vmov 2   ;;  %v827_v4 = vmov 0   ;;  %v43_v5 = vld [vmem:[%s1096_s1 + $0x38] sm:$0xff]  ;;  %v828_v6 = vmov 1  }
   0x4   :  { %750 = vset.pattern.permute.xlu0 %v826_v3  ;;  %744 = vset.pattern.permute.xlu1 %v827_v4  ;;  %v39_v7 = vld [vmem:[%s1096_s1 + $0x18] sm:$0xff] }
   0x5   :  { %76 = vperm.xlu1 %744, %v42_v1   ;;  %169 = vperm.xlu0 %750, %v41_v2  }
   0x9   :  { %745 = vset.pattern.permute.xlu1 %v828_v6  ;;  %751 = vset.pattern.permute.xlu0 %v828_v6 }
   0xa   :  { %121 = vperm.xlu1 %745, %v42_v1   ;;  %125 = vperm.xlu0 %751, %v43_v5  }
   0xe   :  { %746 = vset.pattern.permute.xlu1 %v826_v3  ;;  %109 = vperm.xlu0 %751, %v39_v7  }
   0xf   :  { %16 = vsyncpa [#allocation4], 0  ;;  %177 = vperm.xlu1 %746, %v43_v5   ;;  %v37_v8 = vld [vmem:[%s1096_s1 + $0x8] sm:$0xff]  ;;  %v40_v9 = vld [vmem:[%s1096_s1 + $0x20] sm:$0xff]  ;;  %vm320_vm0 = vcmask 523264   ;;  %v84_v42 = vlaneseq }
  0x10   :  { %v207_v10 = vld [vmem:[%s1097_s2 + $0x38] sm:$0xff]  ;;  %v38_v11 = vld [vmem:[%s1096_s1 + $0x10] sm:$0xff]  ;;  %v205_v12 = vld [vmem:[%s1097_s2 + $0x28] sm:$0xff] }
  0x11   :  { %v36_v13 = vld [vmem:[%s1096_s1] sm:$0xff]  ;;  %v203_v14 = vld [vmem:[%s1097_s2 + $0x18] sm:$0xff]  ;;  %v206_v15 = vld [vmem:[%s1097_s2 + $0x30] sm:$0xff]  ;;  %v1003_v45 = vshrl.u32 %v84_v42, 7 }
  0x12   :  { %101 = vperm.xlu0 %751, %v37_v8   ;;  %v202_v16 = vld [vmem:[%s1097_s2 + $0x10] sm:$0xff]  ;;  %v200_v17 = vld [vmem:[%s1097_s2] sm:$0xff]  ;;  %v463_v23 = vld [vmem:[%s1101_s6 + $0x8] sm:$0xff] }
  0x13   :  { %747 = vset.pattern.permute.xlu1 %v828_v6  ;;  %v278_v18 = vld [vmem:[%s1099_s4 + $0x30] sm:$0xff]  ;;  %v276_v19 = vld [vmem:[%s1099_s4 + $0x20] sm:$0xff]  ;;  %v465_v24 = vld [vmem:[%s1101_s6 + $0x18] sm:$0xff]  ;;  %v86_v47 = vsub.s32 0, %v1003_v45  ;;  %v130_v48 = vsub.s32 1, %v1003_v45  ;;  %v182_v53 = vsub.s32 2, %v1003_v45 }
  0x14   :  { %117 = vperm.xlu1 %747, %v41_v2   ;;  %v274_v20 = vld [vmem:[%s1099_s4 + $0x10] sm:$0xff]  ;;  %v272_v21 = vld [vmem:[%s1099_s4] sm:$0xff]  ;;  %v588_v25 = vld [vmem:[%s1102_s7 + $0x8] sm:$0xff] }
  0x15   :  { %v204_v22 = vld [vmem:[%s1097_s2 + $0x20] sm:$0xff]  ;;  %v590_v26 = vld [vmem:[%s1102_s7 + $0x18] sm:$0xff]  ;;  %v201_v27 = vld [vmem:[%s1097_s2 + $0x8] sm:$0xff] }
  0x16   :  { %758 = vset.pattern.permute.xlu0 %v827_v4  ;;  %v279_v28 = vld [vmem:[%s1099_s4 + $0x38] sm:$0xff]  ;;  %v277_v29 = vld [vmem:[%s1099_s4 + $0x28] sm:$0xff]  ;;  %v264_v32 = vld [vmem:[%s1098_s3] sm:$0xff] }
  0x17   :  { %81 = vperm.xlu0 %758, %v43_v5   ;;  %v275_v30 = vld [vmem:[%s1099_s4 + $0x18] sm:$0xff]  ;;  %v273_v31 = vld [vmem:[%s1099_s4 + $0x8] sm:$0xff]  ;;  %706 = vmatprep.mubr.msk.f32.mxu0 %vm320_vm0, %v264_v32  ;;  %v462_v33 = vld [vmem:[%s1101_s6] sm:$0xff] }
  0x18   :  { %748 = vset.pattern.permute.xlu1 %v826_v3  ;;  %v464_v34 = vld [vmem:[%s1101_s6 + $0x10] sm:$0xff]  ;;  %v587_v35 = vld [vmem:[%s1102_s7] sm:$0xff] }
  0x19   :  { %173 = vperm.xlu1 %748, %v42_v1   ;;  %v589_v36 = vld [vmem:[%s1102_s7 + $0x10] sm:$0xff]  ;;  %v624_v37 = vld [vmem:[#allocation2] sm:$0x1] }
  0x1a   :  { %v35_v50 = vld [vmem:[%s1095_s0] sm:$0x7] }
  0x1b   :  { %71 = vperm.xlu0 %758, %v41_v2   ;;  %v1014_v52 = vrot.slane %v35_v50, %v86_v47  ;;  %v1017_v54 = vrot.slane %v35_v50, %v130_v48  ;;  %v1021_v58 = vrot.slane %v35_v50, %v182_v53 }
  0x1d   :  { %749 = vset.pattern.permute.xlu1 %v828_v6 }
  0x1e   :  { %113 = vperm.xlu1 %749, %v40_v9  }
  0x1f   :  { %66 = vperm.xlu0 %758, %v40_v9  }
  0x22   :  { %752 = vset.pattern.permute.xlu1 %v827_v4 }
  0x23   :  { %245 = vperm.xlu1 %752, %v207_v10   ;;  %56 = vperm.xlu0 %758, %v38_v11  }
  0x27   :  { %61 = vperm.xlu1 %752, %v39_v7   ;;  %235 = vperm.xlu0 %758, %v205_v12  }
  0x2b   :  { %753 = vset.pattern.permute.xlu1 %v826_v3  ;;  %46 = vperm.xlu0 %758, %v36_v13  }
  0x2c   :  { %165 = vperm.xlu1 %753, %v40_v9  }
  0x2f   :  { %225 = vperm.xlu0 %758, %v203_v14  }
  0x30   :  { %754 = vset.pattern.permute.xlu1 %v827_v4 }
  0x31   :  { %240 = vperm.xlu1 %754, %v206_v15  }
  0x33   :  { %220 = vperm.xlu0 %758, %v202_v16  }
  0x35   :  { %755 = vset.pattern.permute.xlu1 %v828_v6 }
  0x36   :  { %105 = vperm.xlu1 %755, %v38_v11  }
  0x37   :  { %210 = vperm.xlu0 %758, %v200_v17  }
  0x3a   :  { %756 = vset.pattern.permute.xlu1 %v826_v3 }
  0x3b   :  { %161 = vperm.xlu1 %756, %v39_v7   ;;  %312 = vperm.xlu0 %758, %v278_v18  }
  0x3f   :  { %757 = vset.pattern.permute.xlu1 %v827_v4  ;;  %302 = vperm.xlu0 %758, %v276_v19  }
  0x40   :  { %51 = vperm.xlu1 %757, %v37_v8  }
  0x43   :  { %292 = vperm.xlu0 %758, %v274_v20  }
  0x44   :  { %759 = vset.pattern.permute.xlu1 %v826_v3 }
  0x45   :  { %157 = vperm.xlu1 %759, %v38_v11  }
  0x47   :  { %282 = vperm.xlu0 %758, %v272_v21  }
  0x49   :  { %760 = vset.pattern.permute.xlu1 %v827_v4 }
  0x4a   :  { %230 = vperm.xlu1 %760, %v204_v22  }
  0x4b   :  { %473 = vperm.xlu0 %758, %v463_v23  }
  0x4e   :  { %761 = vset.pattern.permute.xlu1 %v828_v6 }
  0x4f   :  { %97 = vperm.xlu1 %761, %v36_v13   ;;  %483 = vperm.xlu0 %758, %v465_v24  }
  0x53   :  { %762 = vset.pattern.permute.xlu1 %v826_v3  ;;  %598 = vperm.xlu0 %758, %v588_v25  }
  0x54   :  { %153 = vperm.xlu1 %762, %v37_v8  }
  0x57   :  { %608 = vperm.xlu0 %758, %v590_v26  }
  0x58   :  { %149 = vperm.xlu1 %762, %v36_v13  }
  0x5c   :  { %763 = vset.pattern.permute.xlu1 %v827_v4 }
  0x5d   :  { %215 = vperm.xlu1 %763, %v201_v27  }
  0x61   :  { %317 = vperm.xlu1 %763, %v279_v28  }
  0x65   :  { %307 = vperm.xlu1 %763, %v277_v29  }
  0x69   :  { %297 = vperm.xlu1 %763, %v275_v30  }
  0x6d   :  { %287 = vperm.xlu1 %763, %v273_v31  }
  0x71   :  { %468 = vperm.xlu1 %763, %v462_v33  }
  0x75   :  { %478 = vperm.xlu1 %763, %v464_v34  }
  0x79   :  { %593 = vperm.xlu1 %763, %v587_v35  }
  0x7d   :  { %603 = vperm.xlu1 %763, %v589_v36  }
  0x80   :  { %v77_v38 = vpop.permute.xlu1 %76  ;;  %v170_v39 = vpop.permute.xlu0 %169 }
  0x81   :  { %627 = vperm.xlu1 %763, %v624_v37   ;;  %v94_v8 = vmul.f32 %v1014_v52, %v77_v38  ;;  %v189_v9 = vmul.f32 %v1021_v58, %v170_v39 }
  0x85   :  { %v122_v40 = vpop.permute.xlu1 %121  ;;  %v126_v41 = vpop.permute.xlu0 %125 }
  0x86   :  { %v139_v56 = vmul.f32 %v1017_v54, %v126_v41  ;;  %v138_v6 = vmul.f32 %v1017_v54, %v122_v40 }
  0x88   :  { %v146_v13 = vadd.f32 %v138_v6, %v94_v8 }
  0x89   :  { %v110_v43 = vpop.permute.xlu0 %109 }
  0x8a   :  { %v178_v44 = vpop.permute.xlu1 %177  ;;  %v135_v26 = vmul.f32 %v1017_v54, %v110_v43 }
  0x8b   :  { %v191_v62 = vmul.f32 %v1021_v58, %v178_v44 }
  0x8d   :  { %v1005_v46 = vpop.permute.xlu0 %101 }
  0x8f   :  { %v118_v49 = vpop.permute.xlu1 %117 }
  0x90   :  { %v137_v7 = vmul.f32 %v1017_v54, %v118_v49 }
  0x92   :  { %v82_v51 = vpop.permute.xlu0 %81 }
  0x93   :  { %v95_v57 = vmul.f32 %v1014_v52, %v82_v51 }
  0x94   :  { %v174_v55 = vpop.permute.xlu1 %173 }
  0x95   :  { %v147_v60 = vadd.f32 %v139_v56, %v95_v57  ;;  %v190_v10 = vmul.f32 %v1021_v58, %v174_v55 }
  0x96   :  { %v72_v59 = vpop.permute.xlu0 %71 }
  0x97   :  { %v199_v63 = vadd.f32 %v191_v62, %v147_v60  ;;  %v93_v4 = vmul.f32 %v1014_v52, %v72_v59  ;;  %v198_v16 = vadd.f32 %v190_v10, %v146_v13  ;;  %v133_v60 = vmul.f32 %v1017_v54, %v1005_v46  ;;  %v266_v10 = vld [vmem:[%s1098_s3 + $0x10] sm:$0xff]  ;;  %v269_v13 = vld [vmem:[%s1098_s3 + $0x28] sm:$0xff] }
  0x99   :  { %v114_v61 = vpop.permute.xlu1 %113  ;;  %v145_v11 = vadd.f32 %v137_v7, %v93_v4 }
  0x9a   :  { %v67_v0 = vpop.permute.xlu0 %66  ;;  %v136_v28 = vmul.f32 %v1017_v54, %v114_v61 }
  0x9b   :  { %v197_v15 = vadd.f32 %v189_v9, %v145_v11  ;;  %v92_v30 = vmul.f32 %v1014_v52, %v67_v0  ;;  %v267_v11 = vld [vmem:[%s1098_s3 + $0x18] sm:$0xff] }
  0x9d   :  { %v144_v39 = vadd.f32 %v136_v28, %v92_v30 }
  0x9e   :  { %v246_v1 = vpop.permute.xlu1 %245  ;;  %v57_v5 = vpop.permute.xlu0 %56 }
  0x9f   :  { %v255_v2 = vadd.f32 %v246_v1, %v199_v63  ;;  %v90_v31 = vmul.f32 %v1014_v52, %v57_v5 }
  0xa1   :  { %764 = vtanh.f32 %v255_v2 }
  0xa2   :  { %v62_v3 = vpop.permute.xlu1 %61  ;;  %v236_v14 = vpop.permute.xlu0 %235 }
  0xa3   :  { %v253_v18 = vadd.f32 %v236_v14, %v197_v15  ;;  %v91_v27 = vmul.f32 %v1014_v52, %v62_v3  ;;  %v270_v14 = vld [vmem:[%s1098_s3 + $0x30] sm:$0xff]  ;;  %v271_v15 = vld [vmem:[%s1098_s3 + $0x38] sm:$0xff] }
  0xa5   :  { %v143_v34 = vadd.f32 %v135_v26, %v91_v27 }
  0xa6   :  { %v47_v23 = vpop.permute.xlu0 %46 }
  0xa7   :  { %v166_v12 = vpop.permute.xlu1 %165  ;;  %v88_v59 = vmul.f32 %v1014_v52, %v47_v23 }
  0xa8   :  { %v188_v35 = vmul.f32 %v1021_v58, %v166_v12  ;;  %v268_v12 = vld [vmem:[%s1098_s3 + $0x20] sm:$0xff] }
  0xaa   :  { %v226_v37 = vpop.permute.xlu0 %225  ;;  %v196_v43 = vadd.f32 %v188_v35, %v144_v39 }
  0xac   :  { %v241_v17 = vpop.permute.xlu1 %240 }
  0xad   :  { %v254_v19 = vadd.f32 %v241_v17, %v198_v16  ;;  %v458_v16 = vld [vmem:[%s1100_s5] sm:$0xff] }
  0xae   :  { %v765_v20 = vpop.eup %764  ;;  %v221_v50 = vpop.permute.xlu0 %220  ;;  %734 = vmatprep.mubr.msk.f32.mxu1 %vm320_vm0, %v458_v16 }
  0xaf   :  { %766 = vtanh.f32 %v254_v19  ;;  %690 = vmatprep.subr.mxu0 %v765_v20 }
  0xb0   :  { %691 = vmatpush3.msra.mxu0 %v765_v20  ;;  %768 = vtanh.f32 %v253_v18 }
  0xb1   :  { %v106_v21 = vpop.permute.xlu1 %105 }
  0xb2   :  { %v134_v32 = vmul.f32 %v1017_v54, %v106_v21  ;;  %v211_v6 = vpop.permute.xlu0 %210 }
  0xb4   :  { %v142_v40 = vadd.f32 %v134_v32, %v90_v31 }
  0xb6   :  { %v162_v22 = vpop.permute.xlu1 %161  ;;  %v313_v21 = vpop.permute.xlu0 %312 }
  0xb7   :  { %v187_v33 = vmul.f32 %v1021_v58, %v162_v22 }
  0xb9   :  { %v195_v41 = vadd.f32 %v187_v33, %v143_v34 }
  0xba   :  { %v303_v26 = vpop.permute.xlu0 %302 }
  0xbb   :  { %v52_v24 = vpop.permute.xlu1 %51  ;;  %v251_v48 = vadd.f32 %v226_v37, %v195_v41 }
  0xbc   :  { %v767_v25 = vpop.eup %766  ;;  %v89_v57 = vmul.f32 %v1014_v52, %v52_v24 }
  0xbd   :  { %692 = vmatprep.subr.mxu0 %v767_v25  ;;  %v769_v29 = vpop.eup %768 }
  0xbe   :  { %693 = vmatpush3.msra.mxu0 %v767_v25  ;;  %v141_v2 = vadd.f32 %v133_v60, %v89_v57  ;;  %v293_v34 = vpop.permute.xlu0 %292 }
  0xbf   :  { %694 = vmatprep.subr.mxu0 %v769_v29 }
  0xc0   :  { %v158_v36 = vpop.permute.xlu1 %157  ;;  %695 = vmatpush3.msra.mxu0 %v769_v29 }
  0xc1   :  { %v186_v38 = vmul.f32 %v1021_v58, %v158_v36 }
  0xc2   :  { %v283_v39 = vpop.permute.xlu0 %282 }
  0xc3   :  { %v194_v42 = vadd.f32 %v186_v38, %v142_v40 }
  0xc5   :  { %v231_v44 = vpop.permute.xlu1 %230  ;;  %v250_v51 = vadd.f32 %v221_v50, %v194_v42 }
  0xc6   :  { %v252_v49 = vadd.f32 %v231_v44, %v196_v43  ;;  %v474_v57 = vpop.permute.xlu0 %473 }
  0xc8   :  { %770 = vtanh.f32 %v252_v49 }
  0xc9   :  { %772 = vtanh.f32 %v251_v48 }
  0xca   :  { %v98_v53 = vpop.permute.xlu1 %97  ;;  %774 = vtanh.f32 %v250_v51 }
  0xcb   :  { %v132_v56 = vmul.f32 %v1017_v54, %v98_v53  ;;  %v459_v53 = vld [vmem:[%s1100_s5 + $0x8] sm:$0xff] }
  0xcd   :  { %v140_v63 = vadd.f32 %v132_v56, %v88_v59  ;;  %v461_v56 = vld [vmem:[%s1100_s5 + $0x18] sm:$0xff] }
  0xcf   :  { %v154_v55 = vpop.permute.xlu1 %153 }
  0xd0   :  { %v185_v61 = vmul.f32 %v1021_v58, %v154_v55  ;;  %v460_v55 = vld [vmem:[%s1100_s5 + $0x10] sm:$0xff]  ;;  %s829_s5 = smov [#allocation3]  }
  0xd1   :  { %s642_s24 = sshll.u32 %s829_s5, 4  ;;  %s643_s24 = int_to_ptr.vmem [resolvable:$true] %s642_s24 }
  0xd2   :  { %v193_v5 = vadd.f32 %v185_v61, %v141_v2  ;;  %s804_s25 = scalar_lea.vmem %s643_s24, 16  ;;  %s808_s4 = scalar_lea.vmem %s643_s24, 32 }
  0xd3   :  { %v150_v62 = vpop.permute.xlu1 %149  ;;  %p805_p0 = scmp.ne.s32.totalorder %s643_s24, %s804_s25  ;;  %p809_p1 = scmp.lt.s32.totalorder %s643_s24, %s643_s24 }
  0xd4   :  { %v184_v0 = vmul.f32 %v1021_v58, %v150_v62  ;;  %v265_v58 = vld [vmem:[%s1098_s3 + $0x8] sm:$0xff]  ;;  %p810_p2 = scmp.lt.s32.totalorder %s808_s4, %s804_s25 }
  0xd5   :  { %v771_v1 = vpop.eup %770 }
  0xd6   :  { %v192_v3 = vadd.f32 %v184_v0, %v140_v63  ;;  %696 = vmatprep.subr.mxu0 %v771_v1  ;;  %v773_v4 = vpop.eup %772  ;;  %v484_v0 = vpop.permute.xlu0 %483  ;;  %p811_p3 = por %p810_p2, %p809_p1 }
  0xd7   :  { %697 = vmatpush3.msra.mxu0 %v771_v1  ;;  %v775_v52 = vpop.eup %774 }
  0xd8   :  { %v216_v7 = vpop.permute.xlu1 %215  ;;  %698 = vmatprep.subr.mxu0 %v773_v4  ;;  %v248_v8 = vadd.f32 %v211_v6, %v192_v3  ;;  %p812_p4 = pnand %p811_p3, %p805_p0 }
  0xd9   :  { %v249_v9 = vadd.f32 %v216_v7, %v193_v5  ;;  %699 = vmatpush3.msra.mxu0 %v773_v4 }
  0xda   :  { %700 = vmatprep.subr.mxu0 %v775_v52 }
  0xdb   :  { %776 = vtanh.f32 %v249_v9  ;;  %701 = vmatpush3.msra.mxu0 %v775_v52 }
  0xdc   :  { %778 = vtanh.f32 %v248_v8  ;;  %v318_v19 = vpop.permute.xlu1 %317  ;;  %v599_v8 = vpop.permute.xlu0 %598 }
  0xe0   :  { %v308_v24 = vpop.permute.xlu1 %307 }
  0xe4   :  { %v298_v32 = vpop.permute.xlu1 %297 }
  0xe8   :  { %v777_v46 = vpop.eup %776  ;;  %v288_v37 = vpop.permute.xlu1 %287 }
  0xe9   :  { %702 = vmatprep.subr.mxu0 %v777_v46  ;;  %v779_v54 = vpop.eup %778 }
  0xea   :  { %703 = vmatpush3.msra.mxu0 %v777_v46 }
  0xeb   :  { %704 = vmatprep.subr.mxu0 %v779_v54 }
  0xec   :  { %705 = vmatpush3.msra.mxu0 %v779_v54  ;;  %v469_v59 = vpop.permute.xlu1 %468 }
  0xed   :  { %707 = vmatmul.mubr.msk.f32.vlgmr.msra.gmra.mxu0 %vm320_vm0, %v265_v58 }
  0xee   :  { %709 = vmatprep.mubr.msk.f32.mxu0 %vm320_vm0, %v266_v10 }
  0xf0   :  { %v479_v3 = vpop.permute.xlu1 %478 }
  0xf1   :  { %710 = vmatmul.mubr.msk.f32.gmra.mxu0 %vm320_vm0, %v267_v11 }
  0xf2   :  { %712 = vmatprep.mubr.msk.f32.mxu0 %vm320_vm0, %v268_v12 }
  0xf4   :  { %v594_v6 = vpop.permute.xlu1 %593 }
  0xf5   :  { %713 = vmatmul.mubr.msk.f32.gmra.mxu0 %vm320_vm0, %v269_v13  ;;  %v609_v13 = vpop.permute.xlu0 %608 }
  0xf6   :  { %715 = vmatprep.mubr.msk.f32.mxu0 %vm320_vm0, %v270_v14 }
  0xf8   :  { %v604_v10 = vpop.permute.xlu1 %603 }
  0xf9   :  { %716 = vmatmul.mubr.msk.f32.gmra.mxu0 %vm320_vm0, %v271_v15 }
 0x1ad   :  { %v708_v17 = vpop.f32.mrf.mxu0 }
 0x1ae   :  { %v417_v38 = vadd.f32 %v708_v17, %v288_v37 }
 0x1af   :  { %v411_v18 = vpop.f32.mrf.mxu0 }
 0x1b0   :  { %v412_v40 = vadd.f32 %v411_v18, %v283_v39 }
 0x1b1   :  { %v711_v20 = vpop.f32.mrf.mxu0 }
 0x1b2   :  { %v427_v35 = vadd.f32 %v711_v20, %v298_v32 }
 0x1b3   :  { %v421_v22 = vpop.f32.mrf.mxu0 }
 0x1b4   :  { %v422_v36 = vadd.f32 %v421_v22, %v293_v34 }
 0x1b5   :  { %v714_v23 = vpop.f32.mrf.mxu0 }
 0x1b6   :  { %v437_v30 = vadd.f32 %v714_v23, %v308_v24 }
 0x1b7   :  { %v431_v25 = vpop.f32.mrf.mxu0 }
 0x1b8   :  { %v432_v33 = vadd.f32 %v431_v25, %v303_v26 }
 0x1b9   :  { %v717_v27 = vpop.f32.mrf.mxu0 }
 0x1ba   :  { %v447_v28 = vadd.f32 %v717_v27, %v318_v19 }
 0x1bb   :  { %v441_v29 = vpop.f32.mrf.mxu0 }
 0x1bc   :  { %780 = vtanh.f32 %v447_v28  ;;  %v442_v31 = vadd.f32 %v441_v29, %v313_v21  ;;  %v628_v21 = vpop.permute.xlu1 %627 }
 0x1bd   :  { %v633_v23 = vrot.slane %v628_v21, %v86_v47 }
 0x1be   :  { %782 = vtanh.f32 %v442_v31 }
 0x1bf   :  { %784 = vtanh.f32 %v437_v30 }
 0x1c0   :  { %786 = vtanh.f32 %v432_v33 }
 0x1c1   :  { %788 = vtanh.f32 %v427_v35 }
 0x1c2   :  { %790 = vtanh.f32 %v422_v36 }
 0x1c3   :  { %792 = vtanh.f32 %v417_v38 }
 0x1c4   :  { %794 = vtanh.f32 %v412_v40 }
 0x1c9   :  { %v781_v41 = vpop.eup %780 }
 0x1ca   :  { %718 = vmatprep.subr.mxu1 %v781_v41 }
 0x1cb   :  { %v783_v42 = vpop.eup %782  ;;  %719 = vmatpush3.msra.mxu1 %v781_v41 }
 0x1cc   :  { %720 = vmatprep.subr.mxu1 %v783_v42  ;;  %v785_v43 = vpop.eup %784 }
 0x1cd   :  { %721 = vmatpush3.msra.mxu1 %v783_v42  ;;  %v787_v44 = vpop.eup %786 }
 0x1ce   :  { %722 = vmatprep.subr.mxu1 %v785_v43  ;;  %v789_v48 = vpop.eup %788 }
 0x1cf   :  { %723 = vmatpush3.msra.mxu1 %v785_v43  ;;  %v791_v49 = vpop.eup %790 }
 0x1d0   :  { %724 = vmatprep.subr.mxu1 %v787_v44  ;;  %v793_v50 = vpop.eup %792 }
 0x1d1   :  { %725 = vmatpush3.msra.mxu1 %v787_v44  ;;  %v795_v51 = vpop.eup %794 }
 0x1d2   :  { %726 = vmatprep.subr.mxu1 %v789_v48 }
 0x1d3   :  { %727 = vmatpush3.msra.mxu1 %v789_v48 }
 0x1d4   :  { %728 = vmatprep.subr.mxu1 %v791_v49 }
 0x1d5   :  { %729 = vmatpush3.msra.mxu1 %v791_v49 }
 0x1d6   :  { %730 = vmatprep.subr.mxu1 %v793_v50 }
 0x1d7   :  { %731 = vmatpush3.msra.mxu1 %v793_v50 }
 0x1d8   :  { %732 = vmatprep.subr.mxu1 %v795_v51 }
 0x1d9   :  { %733 = vmatpush3.msra.mxu1 %v795_v51 }
 0x1da   :  { %735 = vmatmul.mubr.msk.f32.vlgmr.msra.gmra.mxu1 %vm320_vm0, %v459_v53 }
 0x1db   :  { %737 = vmatprep.mubr.msk.f32.mxu1 %vm320_vm0, %v460_v55 }
 0x1de   :  { %738 = vmatmul.mubr.msk.f32.gmra.mxu1 %vm320_vm0, %v461_v56 }
 0x29a   :  { %v736_v60 = vpop.f32.mrf.mxu1 }
 0x29b   :  { %v570_v61 = vadd.f32 %v736_v60, %v474_v57 }
 0x29c   :  { %v564_v62 = vpop.f32.mrf.mxu1 }
 0x29d   :  { %v565_v63 = vadd.f32 %v564_v62, %v469_v59  ;;  %796 = vtanh.f32 %v570_v61 }
 0x29e   :  { %v739_v1 = vpop.f32.mrf.mxu1 }
 0x29f   :  { %798 = vtanh.f32 %v565_v63  ;;  %v580_v2 = vadd.f32 %v739_v1, %v484_v0 }
 0x2a0   :  { %v574_v4 = vpop.f32.mrf.mxu1 }
 0x2a1   :  { %v575_v5 = vadd.f32 %v574_v4, %v479_v3  ;;  %800 = vtanh.f32 %v580_v2 }
 0x2a3   :  { %802 = vtanh.f32 %v575_v5 }
 0x2aa   :  { %v797_v7 = vpop.eup %796 }
 0x2ab   :  { %v612_v54 = vmul.f32 %v797_v7, %v599_v8 }
 0x2ac   :  { %v799_v52 = vpop.eup %798 }
 0x2ad   :  { %v611_v9 = vmul.f32 %v799_v52, %v594_v6 }
 0x2ae   :  { %v801_v46 = vpop.eup %800 }
 0x2af   :  { %v615_v12 = vadd.f32 %v612_v54, %v611_v9  ;;  %v614_v14 = vmul.f32 %v801_v46, %v609_v13 }
 0x2b0   :  { %v803_v58 = vpop.eup %802 }
 0x2b1   :  { %v613_v11 = vmul.f32 %v803_v58, %v604_v10 }
 0x2b3   :  { %v616_v15 = vadd.f32 %v615_v12, %v613_v11 }
 0x2b5   :  { %v617_v16 = vadd.f32 %v616_v15, %v614_v14 }
 0x2b7   :  { %v618_v17 = vrot.slane %v617_v16, 4 }
 0x2b9   :  { %v619_v18 = vadd.f32 %v618_v17, %v617_v16 }
 0x2bb   :  { %v620_v19 = vrot.slane %v619_v18, 2 }
 0x2bd   :  { %v621_v20 = vadd.f32 %v620_v19, %v619_v18 }
 0x2bf   :  { %v622_v22 = vrot.slane %v621_v20, 1 }
 0x2c1   :  { %v623_v24 = vadd.f32 %v622_v22, %v621_v20 }
 0x2c3   :  { %v634_v25 = vadd.f32 %v633_v23, %v623_v24 }
 0x2c5   :  { %635 = vst [vmem:[#allocation3] sm:$0x1] %v634_v25 }
 0x2c6   :  { %815 = shalt.err (!%p812_p4)
}
 0x2c7   :  { %645 = dma.vmem_to_hbm [thread:$0]  %s643_s24, 16, %s1104_s9, [#allocation4]  }
 0x2c8   :  { %824 = dma.done.wait [#allocation4], 16  }
 0x2c9   :  { %825 = vsyncadd [#allocation4], 4294967280 }
 0x2ca   :  { %649 = vsyncpa [#allocation4], 1 }

</bundles_post_ra>
